<compile_context>
chip_gen: v7x
topology: tpu7x:2x2x1
jax: 0.10.0
libtpu: 0.0.40
codegen_flags: <defaults>
</compile_context>

<pallas_src>
import functools

import numpy as np

import jax
import jax.numpy as jnp
from jax.experimental import pallas as pl
from jax.experimental.pallas import tpu as pltpu


# ------------------------------------------------------------------ helpers --

def _make_shift_perms_np(H, W):
    """P[t, p, q] = 1 iff q is the circularly-shifted source site of p for tap t."""
    HW = H * W
    P = np.zeros((9, HW, HW), np.float32)
    for kh in range(3):
        for kw in range(3):
            t = kh * 3 + kw
            for h in range(H):
                for w in range(W):
                    p = h * W + w
                    q = ((h + kh - 1) % H) * W + ((w + kw - 1) % W)
                    P[t, p, q] = 1.0
    return P


def _conv_to_dense(w_oihw, H, W):
    """Fold a circular-padded 3x3 conv into a dense (Cout*HW, Cin*HW) matrix.

    Row index  r = o*HW + p   (output channel-major, spatial row-major)
    Col index  c = i*HW + q   (input  channel-major, spatial row-major)
    """
    w = np.asarray(w_oihw, np.float32)
    Cout, Cin = w.shape[0], w.shape[1]
    HW = H * W
    P = _make_shift_perms_np(H, W)                      # (9, HW, HW)
    wt = w.reshape(Cout, Cin, 9)                        # tap t = kh*3 + kw
    A = np.einsum("oit,tpq->opiq", wt, P)               # (Cout, HW, Cin, HW)
    return jnp.asarray(A.reshape(Cout * HW, Cin * HW), jnp.float32)


def unpack_spins(packed, number_spins):
    """nqs.unpack equivalent: packed bit i (LSB first) -> spin i in {-1,+1} (f32)."""
    shifts = jnp.arange(number_spins, dtype=packed.dtype)
    bits = (packed[:, None] >> shifts) & jnp.asarray(1, packed.dtype)
    return 2.0 * bits.astype(jnp.float32) - 1.0


# ------------------------------------------------------------------- kernel --

def _log_amplitude_kernel(xp_ref, a1_ref, b1_ref, a2_ref, b2_ref, a3_ref,
                          b3_ref, wt_ref, out_ref, *, hw):
    mm = a1_ref.dtype   # matmul-operand / epilogue dtype (bf16 default, f32 opt)

    # --- nqs.unpack on the VPU: packed bit s (LSB first) -> spin s in {-1,+1}.
    packed = xp_ref[...]                                             # (1, TB) i32
    tb = packed.shape[-1]
    bit_idx = jax.lax.broadcasted_iota(jnp.int32, (hw, tb), 0)       # row = bit
    bits = jnp.right_shift(jnp.broadcast_to(packed, (hw, tb)), bit_idx) & 1
    x = (2.0 * bits.astype(jnp.float32) - 1.0).astype(mm)            # (HW, TB)

    # --- layer 1: (C*HW, HW) @ (HW, TB), f32 accumulation; bias+ReLU in mm dtype
    z = jnp.dot(a1_ref[...], x, preferred_element_type=jnp.float32)
    z = jnp.maximum(z.astype(mm) + b1_ref[...], 0)

    # --- layers 2 & 3: (C*HW, C*HW) @ (C*HW, TB), M = K = 128
    z = jnp.dot(a2_ref[...], z, preferred_element_type=jnp.float32)
    z = jnp.maximum(z.astype(mm) + b2_ref[...], 0)
    z = jnp.dot(a3_ref[...], z, preferred_element_type=jnp.float32)
    z = jnp.maximum(z.astype(mm) + b3_ref[...], 0)

    # --- spatial sum + Linear(C, 1, bias=False) as one (1, C*HW) MXU row-dot.
    out_ref[...] = jnp.dot(wt_ref[...], z, preferred_element_type=jnp.float32)


def log_amplitude_pallas(x_packed, params, shape, *, tile_b=1024, use_bf16=True):
    """Forward pass. x_packed: (B,) int32 packed spin configurations."""
    H, W = shape
    HW = H * W
    B = x_packed.shape[0]
    C = params["b1"].shape[0]
    CHW = C * HW
    assert tile_b % 128 == 0, "tile_b must be a multiple of the 128-lane width"

    mm = jnp.bfloat16 if use_bf16 else jnp.float32

    # Batch on lanes; do not over-pad small batches past one lane-aligned tile.
    tb = min(tile_b, ((B + 127) // 128) * 128)
    n_tiles = pl.cdiv(B, tb)
    Bp = n_tiles * tb
    xp = jnp.zeros((1, Bp), jnp.int32).at[0, :B].set(x_packed.astype(jnp.int32))

    a1 = params["A1"].astype(mm)
    a2 = params["A2"].astype(mm)
    a3 = params["A3"].astype(mm)
    b1 = params["b1d"].astype(mm)
    b2 = params["b2d"].astype(mm)
    b3 = params["b3d"].astype(mm)
    wt = params["wtr"].astype(mm)

    wfull = lambda b: (0, 0)
    kernel = functools.partial(_log_amplitude_kernel, hw=HW)

    out = pl.pallas_call(
        kernel,
        out_shape=jax.ShapeDtypeStruct((1, Bp), jnp.float32),
        grid=(n_tiles,),
        in_specs=[
            pl.BlockSpec((1, tb), lambda b: (0, b)),        # packed spins (lanes)
            pl.BlockSpec((CHW, HW), wfull),                 # dense conv1 matrix
            pl.BlockSpec((CHW, 1), wfull),                  # conv1 bias (per row)
            pl.BlockSpec((CHW, CHW), wfull),                # dense conv2 matrix
            pl.BlockSpec((CHW, 1), wfull),                  # conv2 bias
            pl.BlockSpec((CHW, CHW), wfull),                # dense conv3 matrix
            pl.BlockSpec((CHW, 1), wfull),                  # conv3 bias
            pl.BlockSpec((1, CHW), wfull),                  # tail weight row
        ],
        out_specs=pl.BlockSpec((1, tb), lambda b: (0, b)),  # lane-dense output
        compiler_params=pltpu.CompilerParams(
            dimension_semantics=("parallel",),
            vmem_limit_bytes=32 * 1024 * 1024),
    )(xp, a1, b1, a2, b2, a3, b3, wt)

    return out[0, :B].reshape(B, 1)


# ----------------------------------------------------------- params & glue --

def init_params(key, shape, number_channels=8):
    H, W = shape
    HW = H * W
    C = number_channels
    ks = jax.random.split(key, 7)

    def conv_w(k, out_c, in_c):
        return jax.random.normal(k, (out_c, in_c, 3, 3), jnp.float32) / np.sqrt(in_c * 9)

    w1 = conv_w(ks[0], C, 1)
    b1 = 0.1 * jax.random.normal(ks[1], (C,), jnp.float32)
    w2 = conv_w(ks[2], C, C)
    b2 = 0.1 * jax.random.normal(ks[3], (C,), jnp.float32)
    w3 = conv_w(ks[4], C, C)
    b3 = 0.1 * jax.random.normal(ks[5], (C,), jnp.float32)
    wt = jax.random.normal(ks[6], (1, C), jnp.float32) / np.sqrt(C)   # torch Linear (1, C)

    def expand_rows(v):   # per-channel value -> per (channel, site) row, (C*HW, 1)
        return jnp.repeat(v.reshape(-1), HW)[:, None].astype(jnp.float32)

    return dict(
        # torch-layout params (used by the pure-JAX reference)
        w1=w1, b1=b1, w2=w2, b2=b2, w3=w3, b3=b3, wt=wt,
        # kernel-layout params: dense per-layer matrices + row-expanded vectors
        A1=_conv_to_dense(w1, H, W),       # (C*HW, HW)
        A2=_conv_to_dense(w2, H, W),       # (C*HW, C*HW)
        A3=_conv_to_dense(w3, H, W),       # (C*HW, C*HW)
        b1d=expand_rows(b1), b2d=expand_rows(b2), b3d=expand_rows(b3),
        wtr=jnp.repeat(wt.reshape(-1), HW)[None, :].astype(jnp.float32),  # (1, C*HW)
    )


def reference_forward(spins, params, shape):
    """Pure-JAX replica of the PyTorch LogAmplitude.forward (NCHW)."""
    H, W = shape
    B = spins.shape[0]
    x = spins.reshape(B, 1, H, W)
    for w, b in ((params["w1"], params["b1"]),
                 (params["w2"], params["b2"]),
                 (params["w3"], params["b3"])):
        x = jnp.concatenate([x[:, :, -1:, :], x, x[:, :, :1, :]], axis=2)
        x = jnp.concatenate([x[:, :, :, -1:], x, x[:, :, :, :1]], axis=3)
        x = jax.lax.conv_general_dilated(
            x, w, window_strides=(1, 1), padding="VALID",
            dimension_numbers=("NCHW", "OIHW", "NCHW")) + b.reshape(1, -1, 1, 1)
        x = jnp.maximum(x, 0.0)
    feats = x.reshape(B, x.shape[1], -1).sum(axis=2)     # (B, C)
    return feats @ params["wt"].T                         # (B, 1)


# --------------------------------------------------------------------- main --

if __name__ == "__main__":
    lattice_shape = (4, 4)        # LogAmplitude(shape=(4, 4))
    number_channels = 8
    number_spins = lattice_shape[0] * lattice_shape[1]

    key = jax.random.PRNGKey(0)
    k_params, k_x = jax.random.split(key)

    params = init_params(k_params, lattice_shape, number_channels=number_channels)

    # --- small check (batch = 2): exact f32 path vs pure-JAX reference @ 1e-3.
    batch = 2
    x_packed = jax.random.randint(k_x, (batch,), 0, 2 ** number_spins, dtype=jnp.int32)
    spins = unpack_spins(x_packed, number_spins)          # (B, 16) in {-1, +1}
    ref = reference_forward(spins, params, lattice_shape)

    out_f32 = jax.block_until_ready(
        log_amplitude_pallas(x_packed, params, lattice_shape, use_bf16=False))
    np.testing.assert_allclose(np.asarray(out_f32), np.asarray(ref),
                               rtol=1e-3, atol=1e-3)

    # --- default fast path: bf16 MXU operands (f32 accumulation), looser tol.
    out_bf16 = jax.block_until_ready(
        log_amplitude_pallas(x_packed, params, lattice_shape))
    np.testing.assert_allclose(np.asarray(out_bf16), np.asarray(ref),
                               rtol=5e-2, atol=1e-1)

    # --- multi-tile check: batch = 384 with tile_b=128 -> grid of 3 lane tiles.
    x_packed2 = jax.random.randint(jax.random.PRNGKey(1), (384,), 0,
                                   2 ** number_spins, dtype=jnp.int32)
    spins2 = unpack_spins(x_packed2, number_spins)
    ref2 = reference_forward(spins2, params, lattice_shape)
    out2 = jax.block_until_ready(
        log_amplitude_pallas(x_packed2, params, lattice_shape,
                             tile_b=128, use_bf16=False))
    np.testing.assert_allclose(np.asarray(out2), np.asarray(ref2),
                               rtol=1e-3, atol=1e-3)

    print("KERNEL_OK")
</pallas_src>

<mosaic_0001>
module attributes {stable_mosaic.version = 11 : i64} {
  func.func @_log_amplitude_kernel(%arg0: i32, %arg1: memref<1x128xi32, #tpu.memory_space<vmem>>, %arg2: memref<128x16xf32, #tpu.memory_space<vmem>>, %arg3: memref<128x1xf32, #tpu.memory_space<vmem>>, %arg4: memref<128x128xf32, #tpu.memory_space<vmem>>, %arg5: memref<128x1xf32, #tpu.memory_space<vmem>>, %arg6: memref<128x128xf32, #tpu.memory_space<vmem>>, %arg7: memref<128x1xf32, #tpu.memory_space<vmem>>, %arg8: memref<1x128xf32, #tpu.memory_space<vmem>>, %arg9: memref<1x128xf32, #tpu.memory_space<vmem>>) attributes {dimension_semantics = [#tpu.dimension_semantics<parallel>], iteration_bounds = array<i64: 1>, scalar_prefetch = 0 : i64, scratch_operands = 0 : i64, tpu.core_type = #tpu.core_type<tc>, window_params = [{transform_indices = @transform_0, window_bounds = array<i64: 1, 128>}, {pipeline_mode = #tpu.pipeline_mode<synchronous>, transform_indices = @transform_1, window_bounds = array<i64: 128, 16>}, {pipeline_mode = #tpu.pipeline_mode<synchronous>, transform_indices = @transform_2, window_bounds = array<i64: 128, 1>}, {pipeline_mode = #tpu.pipeline_mode<synchronous>, transform_indices = @transform_3, window_bounds = array<i64: 128, 128>}, {pipeline_mode = #tpu.pipeline_mode<synchronous>, transform_indices = @transform_4, window_bounds = array<i64: 128, 1>}, {pipeline_mode = #tpu.pipeline_mode<synchronous>, transform_indices = @transform_5, window_bounds = array<i64: 128, 128>}, {pipeline_mode = #tpu.pipeline_mode<synchronous>, transform_indices = @transform_6, window_bounds = array<i64: 128, 1>}, {pipeline_mode = #tpu.pipeline_mode<synchronous>, transform_indices = @transform_7, window_bounds = array<i64: 1, 128>}, {transform_indices = @transform_8, window_bounds = array<i64: 1, 128>}]} {
    %c0 = arith.constant 0 : index
    %c0_0 = arith.constant 0 : index
    %0 = vector.load %arg1[%c0, %c0_0] : memref<1x128xi32, #tpu.memory_space<vmem>>, vector<1x128xi32>
    %1 = tpu.iota {dimensions = array<i32: 0>} : vector<16x128xi32>
    %2 = vector.shape_cast %0 : vector<1x128xi32> to vector<1x128xi32>
    %3 = vector.broadcast %2 : vector<1x128xi32> to vector<16x128xi32>
    %4 = arith.shrsi %3, %1 : vector<16x128xi32>
    %c1_i32 = arith.constant 1 : i32
    %5 = vector.broadcast %c1_i32 : i32 to vector<16x128xi32>
    %6 = arith.andi %4, %5 : vector<16x128xi32>
    %7 = arith.sitofp %6 : vector<16x128xi32> to vector<16x128xf32>
    %cst = arith.constant 2.000000e+00 : f32
    %8 = vector.broadcast %cst : f32 to vector<16x128xf32>
    %9 = arith.mulf %8, %7 : vector<16x128xf32>
    %cst_1 = arith.constant 1.000000e+00 : f32
    %10 = vector.broadcast %cst_1 : f32 to vector<16x128xf32>
    %11 = arith.subf %9, %10 : vector<16x128xf32>
    %c0_2 = arith.constant 0 : index
    %c0_3 = arith.constant 0 : index
    %12 = vector.load %arg2[%c0_2, %c0_3] : memref<128x16xf32, #tpu.memory_space<vmem>>, vector<128x16xf32>
    %cst_4 = arith.constant dense<0.000000e+00> : vector<128x128xf32>
    %13 = tpu.matmul %12, %11, %cst_4 {dimension_numbers = #tpu.dot_dimension_numbers<[1], [0], [0], [1], [0, 0, 1, 1], [], []>} : vector<128x16xf32>, vector<16x128xf32>, vector<128x128xf32> -> vector<128x128xf32>
    %c0_5 = arith.constant 0 : index
    %c0_6 = arith.constant 0 : index
    %14 = vector.load %arg3[%c0_5, %c0_6] : memref<128x1xf32, #tpu.memory_space<vmem>>, vector<128x1xf32>
    %15 = vector.broadcast %14 : vector<128x1xf32> to vector<128x128xf32>
    %16 = arith.addf %13, %15 : vector<128x128xf32>
    %cst_7 = arith.constant 0.000000e+00 : f32
    %17 = vector.broadcast %cst_7 : f32 to vector<128x128xf32>
    %18 = arith.maximumf %16, %17 : vector<128x128xf32>
    %c0_8 = arith.constant 0 : index
    %c0_9 = arith.constant 0 : index
    %19 = vector.load %arg4[%c0_8, %c0_9] : memref<128x128xf32, #tpu.memory_space<vmem>>, vector<128x128xf32>
    %cst_10 = arith.constant dense<0.000000e+00> : vector<128x128xf32>
    %20 = tpu.matmul %19, %18, %cst_10 {dimension_numbers = #tpu.dot_dimension_numbers<[1], [0], [0], [1], [0, 0, 1, 1], [], []>} : vector<128x128xf32>, vector<128x128xf32>, vector<128x128xf32> -> vector<128x128xf32>
    %c0_11 = arith.constant 0 : index
    %c0_12 = arith.constant 0 : index
    %21 = vector.load %arg5[%c0_11, %c0_12] : memref<128x1xf32, #tpu.memory_space<vmem>>, vector<128x1xf32>
    %22 = vector.broadcast %21 : vector<128x1xf32> to vector<128x128xf32>
    %23 = arith.addf %20, %22 : vector<128x128xf32>
    %cst_13 = arith.constant 0.000000e+00 : f32
    %24 = vector.broadcast %cst_13 : f32 to vector<128x128xf32>
    %25 = arith.maximumf %23, %24 : vector<128x128xf32>
    %c0_14 = arith.constant 0 : index
    %c0_15 = arith.constant 0 : index
    %26 = vector.load %arg6[%c0_14, %c0_15] : memref<128x128xf32, #tpu.memory_space<vmem>>, vector<128x128xf32>
    %cst_16 = arith.constant dense<0.000000e+00> : vector<128x128xf32>
    %27 = tpu.matmul %26, %25, %cst_16 {dimension_numbers = #tpu.dot_dimension_numbers<[1], [0], [0], [1], [0, 0, 1, 1], [], []>} : vector<128x128xf32>, vector<128x128xf32>, vector<128x128xf32> -> vector<128x128xf32>
    %c0_17 = arith.constant 0 : index
    %c0_18 = arith.constant 0 : index
    %28 = vector.load %arg7[%c0_17, %c0_18] : memref<128x1xf32, #tpu.memory_space<vmem>>, vector<128x1xf32>
    %29 = vector.broadcast %28 : vector<128x1xf32> to vector<128x128xf32>
    %30 = arith.addf %27, %29 : vector<128x128xf32>
    %cst_19 = arith.constant 0.000000e+00 : f32
    %31 = vector.broadcast %cst_19 : f32 to vector<128x128xf32>
    %32 = arith.maximumf %30, %31 : vector<128x128xf32>
    %c0_20 = arith.constant 0 : index
    %c0_21 = arith.constant 0 : index
    %33 = vector.load %arg8[%c0_20, %c0_21] : memref<1x128xf32, #tpu.memory_space<vmem>>, vector<1x128xf32>
    %cst_22 = arith.constant dense<0.000000e+00> : vector<1x128xf32>
    %34 = tpu.matmul %33, %32, %cst_22 {dimension_numbers = #tpu.dot_dimension_numbers<[1], [0], [0], [1], [0, 0, 1, 1], [], []>} : vector<1x128xf32>, vector<128x128xf32>, vector<1x128xf32> -> vector<1x128xf32>
    %c0_23 = arith.constant 0 : index
    %c0_24 = arith.constant 0 : index
    %35 = vector.load %arg9[%c0_23, %c0_24] : memref<1x128xf32, #tpu.memory_space<vmem>>, vector<1x128xf32>
    tpu.vector_store %arg9[%c0_23, %c0_24], %34 {strides = array<i32>} : memref<1x128xf32, #tpu.memory_space<vmem>>, vector<1x128xf32>,
    return
  }
  func.func @transform_0(%arg0: i32) -> (i32, i32) {
    %c0_i32 = arith.constant 0 : i32
    %c0_i32_0 = arith.constant 0 : i32
    return %c0_i32, %arg0 : i32, i32
  }
  func.func @transform_1(%arg0: i32) -> (i32, i32) {
    %c0_i32 = arith.constant 0 : i32
    %c0_i32_0 = arith.constant 0 : i32
    %c0_i32_1 = arith.constant 0 : i32
    return %c0_i32, %c0_i32_0 : i32, i32
  }
  func.func @transform_2(%arg0: i32) -> (i32, i32) {
    %c0_i32 = arith.constant 0 : i32
    %c0_i32_0 = arith.constant 0 : i32
    %c0_i32_1 = arith.constant 0 : i32
    return %c0_i32, %c0_i32_0 : i32, i32
  }
  func.func @transform_3(%arg0: i32) -> (i32, i32) {
    %c0_i32 = arith.constant 0 : i32
    %c0_i32_0 = arith.constant 0 : i32
    %c0_i32_1 = arith.constant 0 : i32
    return %c0_i32, %c0_i32_0 : i32, i32
  }
  func.func @transform_4(%arg0: i32) -> (i32, i32) {
    %c0_i32 = arith.constant 0 : i32
    %c0_i32_0 = arith.constant 0 : i32
    %c0_i32_1 = arith.constant 0 : i32
    return %c0_i32, %c0_i32_0 : i32, i32
  }
  func.func @transform_5(%arg0: i32) -> (i32, i32) {
    %c0_i32 = arith.constant 0 : i32
    %c0_i32_0 = arith.constant 0 : i32
    %c0_i32_1 = arith.constant 0 : i32
    return %c0_i32, %c0_i32_0 : i32, i32
  }
  func.func @transform_6(%arg0: i32) -> (i32, i32) {
    %c0_i32 = arith.constant 0 : i32
    %c0_i32_0 = arith.constant 0 : i32
    %c0_i32_1 = arith.constant 0 : i32
    return %c0_i32, %c0_i32_0 : i32, i32
  }
  func.func @transform_7(%arg0: i32) -> (i32, i32) {
    %c0_i32 = arith.constant 0 : i32
    %c0_i32_0 = arith.constant 0 : i32
    %c0_i32_1 = arith.constant 0 : i32
    return %c0_i32, %c0_i32_0 : i32, i32
  }
  func.func @transform_8(%arg0: i32) -> (i32, i32) {
    %c0_i32 = arith.constant 0 : i32
    %c0_i32_0 = arith.constant 0 : i32
    return %c0_i32, %arg0 : i32, i32
  }
}

</mosaic_0001>

<bundles_post_ra>
// kernel: tpu_custom_call.1
= control target key start
LH: loop header
LB: loop body
LE: loop exit
PB: predicated region body
PF: predicated region fallthrough
CT: control target
= control target key end

     0   :  { %v31_v2 = vlaneseq  ;;  %vm160_vm0 = vcmask 130048   ;;  %v1418_v3 = vmov 0   ;;  %s1798_s0 = inlined_call_operand.vmem [shape: s32[1,128], index: 0, kind: input, shape index: {}]   ;;  %s1799_s1 = inlined_call_operand.vmem [shape: f32[128,16], index: 1, kind: input, shape index: {}]   ;;  %s1800_s2 = inlined_call_operand.vmem [shape: f32[128,1], index: 2, kind: input, shape index: {}]   ;;  %s1801_s3 = inlined_call_operand.vmem [shape: f32[128,128], index: 3, kind: input, shape index: {}]   ;;  %s1802_s4 = inlined_call_operand.vmem [shape: f32[128,1], index: 4, kind: input, shape index: {}]   ;;  %s1803_s5 = inlined_call_operand.vmem [shape: f32[128,128], index: 5, kind: input, shape index: {}]   ;;  %s1804_s6 = inlined_call_operand.vmem [shape: f32[128,1], index: 6, kind: input, shape index: {}]   ;;  %s1805_s7 = inlined_call_operand.vmem [shape: f32[1,128], index: 7, kind: input, shape index: {}]   ;;  %s1806_s8 = inlined_call_operand.hbm [shape: f32[1,128], index: 8, kind: output, shape index: {}]  }
   0x1   :  { %v64_v0 = vld [vmem:[%s1800_s2] sm:$0xff]  ;;  %v66_v1 = vld [vmem:[%s1800_s2 + $0x10] sm:$0xff]  ;;  %1392 = vset.pattern.permute.xlu0 %v1418_v3  ;;  %1393 = vset.pattern.permute.xlu1 %v1418_v3  ;;  %v65_v7 = vld [vmem:[%s1800_s2 + $0x8] sm:$0xff] }
   0x2   :  { %v1002_v4 = vld [vmem:[%s1798_s0] ss:$0 sm:$0xff]  ;;  %82 = vperm.xlu0 %1392, %v64_v0   ;;  %92 = vperm.xlu1 %1393, %v66_v1   ;;  %v32_v5 = vshrl.u32 %v31_v2, 7  ;;  %v67_v8 = vld [vmem:[%s1800_s2 + $0x18] sm:$0xff]  ;;  %v69_v14 = vld [vmem:[%s1800_s2 + $0x28] sm:$0xff] }
   0x3   :  { %v48_v6 = vld [vmem:[%s1799_s1] sm:$0xff]  ;;  %v70_v19 = vld [vmem:[%s1800_s2 + $0x30] sm:$0xff]  ;;  %v71_v20 = vld [vmem:[%s1800_s2 + $0x38] sm:$0xff] }
   0x4   :  { %1124 = vmatprep.mubr.msk.f32.mxu0 %vm160_vm0, %v48_v6  ;;  %v33_v9 = vadd.s32 8, %v32_v5  ;;  %v38_v10 = vshra.s32 %v1002_v4, %v32_v5  ;;  %v68_v13 = vld [vmem:[%s1800_s2 + $0x20] sm:$0xff]  ;;  %v73_v26 = vld [vmem:[%s1800_s2 + $0x48] sm:$0xff]  ;;  %v74_v28 = vld [vmem:[%s1800_s2 + $0x50] sm:$0xff] }
   0x5   :  { %v72_v24 = vld [vmem:[%s1800_s2 + $0x40] sm:$0xff]  ;;  %v49_v27 = vld [vmem:[%s1799_s1 + $0x8] sm:$0xff]  ;;  %v50_v29 = vld [vmem:[%s1799_s1 + $0x10] sm:$0xff] }
   0x6   :  { %87 = vperm.xlu0 %1392, %v65_v7   ;;  %v39_v11 = vshra.s32 %v1002_v4, %v33_v9  ;;  %v40_v12 = vand.u32 1, %v38_v10  ;;  %97 = vperm.xlu1 %1393, %v67_v8   ;;  %v75_v30 = vld [vmem:[%s1800_s2 + $0x58] sm:$0xff] }
   0x8   :  { %v41_v15 = vand.u32 1, %v39_v11  ;;  %v42_v16 = vcvt.s32.f32 %v40_v12 }
   0xa   :  { %v43_v17 = vcvt.s32.f32 %v41_v15  ;;  %v44_v18 = vmul.f32 2.0, %v42_v16  ;;  %102 = vperm.xlu0 %1392, %v68_v13   ;;  %107 = vperm.xlu1 %1393, %v69_v14  }
   0xc   :  { %v45_v21 = vmul.f32 2.0, %v43_v17  ;;  %v1003_v22 = vadd.f32 -1.0, %v44_v18 }
   0xe   :  { %v1004_v23 = vadd.f32 -1.0, %v45_v21  ;;  %112 = vperm.xlu0 %1392, %v70_v19   ;;  %117 = vperm.xlu1 %1393, %v71_v20  }
  0x10   :  { %v1295_v25 = vpack.c.bf16 %v1004_v23, %v1003_v22 }
  0x12   :  { %1296 = vmatprep.subr.bf16.mxu0 %v1295_v25  ;;  %122 = vperm.xlu0 %1392, %v72_v24  }
  0x13   :  { %1298 = vmatpush3.bf16.msra.mxu0 %v1295_v25  ;;  %127 = vperm.xlu1 %1393, %v73_v26  }
  0x14   :  { %13 = vsyncpa [#allocation3], 0  ;;  %v51_v31 = vld [vmem:[%s1799_s1 + $0x18] sm:$0xff]  ;;  %v76_v32 = vld [vmem:[%s1800_s2 + $0x60] sm:$0xff]  ;;  %vm1420_vm1 = vmmov 0   ;;  %s1422_s19 = smov [#allocation2]  }
  0x15   :  { %v52_v33 = vld [vmem:[%s1799_s1 + $0x20] sm:$0xff]  ;;  %v77_v34 = vld [vmem:[%s1800_s2 + $0x68] sm:$0xff]  ;;  %v78_v36 = vld [vmem:[%s1800_s2 + $0x70] sm:$0xff]  ;;  %s994_s20 = sshll.u32 %s1422_s19, 4  ;;  %s995_s20 = int_to_ptr.vmem [resolvable:$true] %s994_s20 }
  0x16   :  { %1125 = vmatmul.mubr.msk.f32.vlgmr.msra.gmra.mrb[0].mxu0 %vm160_vm0, %v49_v27  ;;  %132 = vperm.xlu0 %1392, %v74_v28   ;;  %v53_v35 = vld [vmem:[%s1799_s1 + $0x28] sm:$0xff]  ;;  %v54_v37 = vld [vmem:[%s1799_s1 + $0x30] sm:$0xff]  ;;  %v79_v38 = vld [vmem:[%s1800_s2 + $0x78] sm:$0xff]  ;;  %s1394_s21 = scalar_lea.vmem %s995_s20, 16  ;;  %s1398_s22 = scalar_lea.vmem %s995_s20, 32 }
  0x17   :  { %1127 = vmatprep.mubr.msk.f32.mxu0 %vm160_vm0, %v50_v29  ;;  %137 = vperm.xlu1 %1393, %v75_v30   ;;  %v55_v39 = vld [vmem:[%s1799_s1 + $0x38] sm:$0xff]  ;;  %v386_v40 = vld [vmem:[%s1802_s4] sm:$0xff]  ;;  %v387_v42 = vld [vmem:[%s1802_s4 + $0x8] sm:$0xff]  ;;  %p1395_p0 = scmp.ne.s32.totalorder %s995_s20, %s1394_s21  ;;  %p1399_p1 = scmp.lt.s32.totalorder %s995_s20, %s995_s20 }
  0x18   :  { %v56_v41 = vld [vmem:[%s1799_s1 + $0x40] sm:$0xff]  ;;  %v57_v43 = vld [vmem:[%s1799_s1 + $0x48] sm:$0xff]  ;;  %v388_v44 = vld [vmem:[%s1802_s4 + $0x10] sm:$0xff]  ;;  %p1400_p2 = scmp.lt.s32.totalorder %s1398_s22, %s1394_s21 }
  0x19   :  { %v58_v45 = vld [vmem:[%s1799_s1 + $0x50] sm:$0xff]  ;;  %v389_v46 = vld [vmem:[%s1802_s4 + $0x18] sm:$0xff]  ;;  %v390_v48 = vld [vmem:[%s1802_s4 + $0x20] sm:$0xff] }
  0x1a   :  { %1128 = vmatmul.mubr.msk.f32.gmra.mrb[2].mxu0 %vm160_vm0, %v51_v31  ;;  %142 = vperm.xlu0 %1392, %v76_v32   ;;  %v59_v47 = vld [vmem:[%s1799_s1 + $0x58] sm:$0xff]  ;;  %v60_v49 = vld [vmem:[%s1799_s1 + $0x60] sm:$0xff]  ;;  %v391_v50 = vld [vmem:[%s1802_s4 + $0x28] sm:$0xff]  ;;  %p1401_p3 = por %p1400_p2, %p1399_p1 }
  0x1b   :  { %1130 = vmatprep.mubr.msk.f32.mxu0 %vm160_vm0, %v52_v33  ;;  %147 = vperm.xlu1 %1393, %v77_v34   ;;  %v61_v51 = vld [vmem:[%s1799_s1 + $0x68] sm:$0xff]  ;;  %v392_v52 = vld [vmem:[%s1802_s4 + $0x30] sm:$0xff]  ;;  %v393_v54 = vld [vmem:[%s1802_s4 + $0x38] sm:$0xff] }
  0x1c   :  { %v62_v53 = vld [vmem:[%s1799_s1 + $0x70] sm:$0xff]  ;;  %v63_v55 = vld [vmem:[%s1799_s1 + $0x78] sm:$0xff]  ;;  %v394_v56 = vld [vmem:[%s1802_s4 + $0x40] sm:$0xff]  ;;  %p1402_p4 = pnand %p1401_p3, %p1395_p0 }
  0x1d   :  { %v395_v57 = vld [vmem:[%s1802_s4 + $0x48] sm:$0xff]  ;;  %v396_v58 = vld [vmem:[%s1802_s4 + $0x50] sm:$0xff]  ;;  %v397_v59 = vld [vmem:[%s1802_s4 + $0x58] sm:$0xff] }
  0x1e   :  { %1131 = vmatmul.mubr.msk.f32.gmra.mrb[4].mxu0 %vm160_vm0, %v53_v35  ;;  %152 = vperm.xlu0 %1392, %v78_v36   ;;  %v398_v60 = vld [vmem:[%s1802_s4 + $0x60] sm:$0xff]  ;;  %v399_v61 = vld [vmem:[%s1802_s4 + $0x68] sm:$0xff]  ;;  %v400_v62 = vld [vmem:[%s1802_s4 + $0x70] sm:$0xff] }
  0x1f   :  { %1133 = vmatprep.mubr.msk.f32.mxu0 %vm160_vm0, %v54_v37  ;;  %157 = vperm.xlu1 %1393, %v79_v38   ;;  %v401_v63 = vld [vmem:[%s1802_s4 + $0x78] sm:$0xff]  ;;  %v659_v0 = vld [vmem:[%s1804_s6] sm:$0xff]  ;;  %v660_v1 = vld [vmem:[%s1804_s6 + $0x8] sm:$0xff] }
  0x20   :  { %v661_v2 = vld [vmem:[%s1804_s6 + $0x10] sm:$0xff]  ;;  %v662_v3 = vld [vmem:[%s1804_s6 + $0x18] sm:$0xff]  ;;  %v663_v4 = vld [vmem:[%s1804_s6 + $0x20] sm:$0xff] }
  0x21   :  { %v664_v5 = vld [vmem:[%s1804_s6 + $0x28] sm:$0xff]  ;;  %v665_v6 = vld [vmem:[%s1804_s6 + $0x30] sm:$0xff]  ;;  %v666_v7 = vld [vmem:[%s1804_s6 + $0x38] sm:$0xff] }
  0x22   :  { %1134 = vmatmul.mubr.msk.f32.gmra.mrb[6].mxu0 %vm160_vm0, %v55_v39  ;;  %404 = vperm.xlu0 %1392, %v386_v40   ;;  %v667_v8 = vld [vmem:[%s1804_s6 + $0x40] sm:$0xff]  ;;  %v668_v9 = vld [vmem:[%s1804_s6 + $0x48] sm:$0xff]  ;;  %v669_v10 = vld [vmem:[%s1804_s6 + $0x50] sm:$0xff] }
  0x23   :  { %1136 = vmatprep.mubr.msk.f32.mxu0 %vm160_vm0, %v56_v41  ;;  %409 = vperm.xlu1 %1393, %v387_v42   ;;  %v670_v11 = vld [vmem:[%s1804_s6 + $0x58] sm:$0xff]  ;;  %v671_v12 = vld [vmem:[%s1804_s6 + $0x60] sm:$0xff]  ;;  %v672_v13 = vld [vmem:[%s1804_s6 + $0x68] sm:$0xff] }
  0x24   :  { %v673_v14 = vld [vmem:[%s1804_s6 + $0x70] sm:$0xff]  ;;  %v674_v15 = vld [vmem:[%s1804_s6 + $0x78] sm:$0xff]  ;;  %v370_v16 = vld [vmem:[%s1801_s3] sm:$0xff] }
  0x25   :  { %1180 = vmatprep.mubr.f32.mxu1 %v370_v16 }
  0x26   :  { %1137 = vmatmul.mubr.msk.f32.gmra.mrb[8].mxu0 %vm160_vm0, %v57_v43  ;;  %414 = vperm.xlu0 %1392, %v388_v44  }
  0x27   :  { %1139 = vmatprep.mubr.msk.f32.mxu0 %vm160_vm0, %v58_v45  ;;  %419 = vperm.xlu1 %1393, %v389_v46  }
  0x2a   :  { %1140 = vmatmul.mubr.msk.f32.gmra.mrb[10].mxu0 %vm160_vm0, %v59_v47  ;;  %424 = vperm.xlu0 %1392, %v390_v48  }
  0x2b   :  { %1142 = vmatprep.mubr.msk.f32.mxu0 %vm160_vm0, %v60_v49  ;;  %429 = vperm.xlu1 %1393, %v391_v50  }
  0x2e   :  { %1143 = vmatmul.mubr.msk.f32.gmra.mrb[12].mxu0 %vm160_vm0, %v61_v51  ;;  %434 = vperm.xlu0 %1392, %v392_v52  }
  0x2f   :  { %1145 = vmatprep.mubr.msk.f32.mxu0 %vm160_vm0, %v62_v53  ;;  %439 = vperm.xlu1 %1393, %v393_v54  }
  0x32   :  { %1146 = vmatmul.mubr.msk.f32.gmra.mrb[14].mxu0 %vm160_vm0, %v63_v55  ;;  %444 = vperm.xlu0 %1392, %v394_v56  }
  0x33   :  { %449 = vperm.xlu1 %1393, %v395_v57  }
  0x36   :  { %454 = vperm.xlu0 %1392, %v396_v58  }
  0x37   :  { %459 = vperm.xlu1 %1393, %v397_v59  }
  0x3a   :  { %464 = vperm.xlu0 %1392, %v398_v60  }
  0x3b   :  { %469 = vperm.xlu1 %1393, %v399_v61  }
  0x3e   :  { %474 = vperm.xlu0 %1392, %v400_v62  }
  0x3f   :  { %479 = vperm.xlu1 %1393, %v401_v63  }
  0x42   :  { %677 = vperm.xlu0 %1392, %v659_v0  }
  0x43   :  { %682 = vperm.xlu1 %1393, %v660_v1  }
  0x46   :  { %687 = vperm.xlu0 %1392, %v661_v2  }
  0x47   :  { %692 = vperm.xlu1 %1393, %v662_v3  }
  0x4a   :  { %697 = vperm.xlu0 %1392, %v663_v4  }
  0x4b   :  { %702 = vperm.xlu1 %1393, %v664_v5  }
  0x4e   :  { %707 = vperm.xlu0 %1392, %v665_v6  }
  0x4f   :  { %712 = vperm.xlu1 %1393, %v666_v7  }
  0x52   :  { %717 = vperm.xlu0 %1392, %v667_v8  }
  0x53   :  { %722 = vperm.xlu1 %1393, %v668_v9  }
  0x56   :  { %727 = vperm.xlu0 %1392, %v669_v10  }
  0x57   :  { %732 = vperm.xlu1 %1393, %v670_v11  }
  0x5a   :  { %737 = vperm.xlu0 %1392, %v671_v12  }
  0x5b   :  { %742 = vperm.xlu1 %1393, %v672_v13  }
  0x5e   :  { %747 = vperm.xlu0 %1392, %v673_v14  }
  0x5f   :  { %752 = vperm.xlu1 %1393, %v674_v15  }
  0x81   :  { %v93_v17 = vpop.permute.xlu1 %92  ;;  %v83_v18 = vpop.permute.xlu0 %82 }
  0x85   :  { %v98_v19 = vpop.permute.xlu1 %97  ;;  %v88_v20 = vpop.permute.xlu0 %87 }
  0x89   :  { %v108_v21 = vpop.permute.xlu1 %107  ;;  %v103_v22 = vpop.permute.xlu0 %102 }
  0x8d   :  { %v118_v28 = vpop.permute.xlu1 %117  ;;  %v113_v31 = vpop.permute.xlu0 %112 }
  0x91   :  { %v123_v44 = vpop.permute.xlu0 %122 }
  0x92   :  { %v128_v41 = vpop.permute.xlu1 %127 }
  0x95   :  { %v133_v56 = vpop.permute.xlu0 %132 }
  0x96   :  { %v138_v53 = vpop.permute.xlu1 %137 }
  0x99   :  { %v143_v5 = vpop.permute.xlu0 %142 }
  0x9a   :  { %v148_v2 = vpop.permute.xlu1 %147 }
  0x9e   :  { %v158_v14 = vpop.permute.xlu1 %157 }
  0xe9   :  { %v1126_v23 = vpop.f32.mrb[0].mxu0 }
  0xea   :  { %v281_v24 = vadd.f32 %v1126_v23, %v88_v20  ;;  %v275_v25 = vpop.f32.mrb[1].mxu0 }
  0xeb   :  { %v276_v26 = vadd.f32 %v275_v25, %v83_v18  ;;  %v371_v25 = vld [vmem:[%s1801_s3 + $0x8] sm:$0xff] }
  0xec   :  { %v355_v27 = vmax.f32 %v281_v24, 0.0 }
  0xed   :  { %v354_v29 = vmax.f32 %v276_v26, 0.0  ;;  %v1129_v30 = vpop.f32.mrb[2].mxu0  ;;  %v372_v26 = vld [vmem:[%s1801_s3 + $0x10] sm:$0xff] }
  0xee   :  { %v291_v32 = vadd.f32 %v1129_v30, %v98_v19  ;;  %v285_v33 = vpop.f32.mrb[3].mxu0  ;;  %v376_v30 = vld [vmem:[%s1801_s3 + $0x30] sm:$0xff] }
  0xef   :  { %v286_v34 = vadd.f32 %v285_v33, %v93_v17  ;;  %v1299_v35 = vpack.c.bf16 %v355_v27, %v354_v29  ;;  %v153_v17 = vpop.permute.xlu0 %152  ;;  %v373_v27 = vld [vmem:[%s1801_s3 + $0x18] sm:$0xff]  ;;  %v375_v29 = vld [vmem:[%s1801_s3 + $0x28] sm:$0xff] }
  0xf0   :  { %v357_v36 = vmax.f32 %v291_v32, 0.0  ;;  %v378_v32 = vld [vmem:[%s1801_s3 + $0x40] sm:$0xff]  ;;  %v379_v33 = vld [vmem:[%s1801_s3 + $0x48] sm:$0xff] }
  0xf1   :  { %v356_v37 = vmax.f32 %v286_v34, 0.0  ;;  %v1132_v38 = vpop.f32.mrb[4].mxu0  ;;  %1300 = vmatprep.subr.bf16.mxu1 %v1299_v35  ;;  %v380_v34 = vld [vmem:[%s1801_s3 + $0x50] sm:$0xff] }
  0xf2   :  { %v301_v39 = vadd.f32 %v1132_v38, %v108_v21  ;;  %v295_v40 = vpop.f32.mrb[5].mxu0  ;;  %1302 = vmatpush3.bf16.msra.mxu1 %v1299_v35  ;;  %v381_v35 = vld [vmem:[%s1801_s3 + $0x58] sm:$0xff]  ;;  %v384_v38 = vld [vmem:[%s1801_s3 + $0x70] sm:$0xff] }
  0xf3   :  { %v1303_v42 = vpack.c.bf16 %v357_v36, %v356_v37  ;;  %v296_v43 = vadd.f32 %v295_v40, %v103_v22  ;;  %v382_v36 = vld [vmem:[%s1801_s3 + $0x60] sm:$0xff]  ;;  %v383_v37 = vld [vmem:[%s1801_s3 + $0x68] sm:$0xff] }
  0xf4   :  { %v359_v45 = vmax.f32 %v301_v39, 0.0  ;;  %v385_v39 = vld [vmem:[%s1801_s3 + $0x78] sm:$0xff]  ;;  %v643_v40 = vld [vmem:[%s1803_s5] sm:$0xff] }
  0xf5   :  { %v358_v46 = vmax.f32 %v296_v43, 0.0  ;;  %v1135_v47 = vpop.f32.mrb[6].mxu0  ;;  %1304 = vmatprep.subr.bf16.mxu1 %v1303_v42  ;;  %1236 = vmatprep.mubr.f32.mxu0 %v643_v40 }
  0xf6   :  { %v311_v48 = vadd.f32 %v1135_v47, %v118_v28  ;;  %v305_v49 = vpop.f32.mrb[7].mxu0  ;;  %1306 = vmatpush3.bf16.msra.mxu1 %v1303_v42  ;;  %v374_v28 = vld [vmem:[%s1801_s3 + $0x20] sm:$0xff]  ;;  %v405_v42 = vpop.permute.xlu0 %404 }
  0xf7   :  { %v1307_v50 = vpack.c.bf16 %v359_v45, %v358_v46  ;;  %v306_v51 = vadd.f32 %v305_v49, %v113_v31  ;;  %v377_v31 = vld [vmem:[%s1801_s3 + $0x38] sm:$0xff] }
  0xf8   :  { %v361_v52 = vmax.f32 %v311_v48, 0.0 }
  0xf9   :  { %v360_v54 = vmax.f32 %v306_v51, 0.0  ;;  %v1138_v55 = vpop.f32.mrb[8].mxu0  ;;  %1308 = vmatprep.subr.bf16.mxu1 %v1307_v50 }
  0xfa   :  { %v321_v57 = vadd.f32 %v1138_v55, %v128_v41  ;;  %v315_v58 = vpop.f32.mrb[9].mxu0  ;;  %1310 = vmatpush3.bf16.msra.mxu1 %v1307_v50  ;;  %v410_v41 = vpop.permute.xlu1 %409 }
  0xfb   :  { %v1311_v59 = vpack.c.bf16 %v361_v52, %v360_v54  ;;  %v316_v60 = vadd.f32 %v315_v58, %v123_v44  ;;  %v415_v44 = vpop.permute.xlu0 %414 }
  0xfc   :  { %v363_v61 = vmax.f32 %v321_v57, 0.0 }
  0xfd   :  { %v362_v62 = vmax.f32 %v316_v60, 0.0  ;;  %v1141_v63 = vpop.f32.mrb[10].mxu0  ;;  %1312 = vmatprep.subr.bf16.mxu1 %v1311_v59 }
  0xfe   :  { %v331_v0 = vadd.f32 %v1141_v63, %v138_v53  ;;  %v325_v1 = vpop.f32.mrb[11].mxu0  ;;  %1314 = vmatpush3.bf16.msra.mxu1 %v1311_v59  ;;  %v420_v43 = vpop.permute.xlu1 %419 }
  0xff   :  { %v1315_v3 = vpack.c.bf16 %v363_v61, %v362_v62  ;;  %v326_v4 = vadd.f32 %v325_v1, %v133_v56  ;;  %v425_v46 = vpop.permute.xlu0 %424 }
 0x100   :  { %v365_v6 = vmax.f32 %v331_v0, 0.0 }
 0x101   :  { %v364_v7 = vmax.f32 %v326_v4, 0.0  ;;  %v1144_v8 = vpop.f32.mrb[12].mxu0  ;;  %1316 = vmatprep.subr.bf16.mxu1 %v1315_v3 }
 0x102   :  { %v341_v9 = vadd.f32 %v1144_v8, %v148_v2  ;;  %v335_v10 = vpop.f32.mrb[13].mxu0  ;;  %1318 = vmatpush3.bf16.msra.mxu1 %v1315_v3  ;;  %v430_v45 = vpop.permute.xlu1 %429 }
 0x103   :  { %v1319_v11 = vpack.c.bf16 %v365_v6, %v364_v7  ;;  %v336_v12 = vadd.f32 %v335_v10, %v143_v5  ;;  %v435_v55 = vpop.permute.xlu0 %434 }
 0x104   :  { %v367_v13 = vmax.f32 %v341_v9, 0.0 }
 0x105   :  { %v366_v15 = vmax.f32 %v336_v12, 0.0  ;;  %v1147_v16 = vpop.f32.mrb[14].mxu0  ;;  %1320 = vmatprep.subr.bf16.mxu1 %v1319_v11 }
 0x106   :  { %v351_v18 = vadd.f32 %v1147_v16, %v158_v14  ;;  %v345_v19 = vpop.f32.mrb[15].mxu0  ;;  %1322 = vmatpush3.bf16.msra.mxu1 %v1319_v11  ;;  %v440_v52 = vpop.permute.xlu1 %439 }
 0x107   :  { %v1323_v20 = vpack.c.bf16 %v367_v13, %v366_v15  ;;  %v346_v21 = vadd.f32 %v345_v19, %v153_v17  ;;  %v445_v4 = vpop.permute.xlu0 %444 }
 0x108   :  { %v369_v22 = vmax.f32 %v351_v18, 0.0 }
 0x109   :  { %v368_v23 = vmax.f32 %v346_v21, 0.0  ;;  %1324 = vmatprep.subr.bf16.mxu1 %v1323_v20 }
 0x10a   :  { %1326 = vmatpush3.bf16.msra.mxu1 %v1323_v20  ;;  %v450_v1 = vpop.permute.xlu1 %449 }
 0x10b   :  { %v1327_v24 = vpack.c.bf16 %v369_v22, %v368_v23  ;;  %v455_v16 = vpop.permute.xlu0 %454 }
 0x10d   :  { %1328 = vmatprep.subr.bf16.mxu1 %v1327_v24 }
 0x10e   :  { %1330 = vmatpush3.bf16.msra.mxu1 %v1327_v24  ;;  %v460_v13 = vpop.permute.xlu1 %459 }
 0x111   :  { %1181 = vmatmul.mubr.f32.vlgmr.msra.gmra.mrb[0].mxu1 %v371_v25 }
 0x112   :  { %1183 = vmatprep.mubr.f32.mxu1 %v372_v26  ;;  %v470_v26 = vpop.permute.xlu1 %469 }
 0x115   :  { %1184 = vmatmul.mubr.f32.gmra.mrb[2].mxu1 %v373_v27 }
 0x116   :  { %1186 = vmatprep.mubr.f32.mxu1 %v374_v28 }
 0x119   :  { %1187 = vmatmul.mubr.f32.gmra.mrb[4].mxu1 %v375_v29  ;;  %v465_v29 = vpop.permute.xlu0 %464 }
 0x11a   :  { %1189 = vmatprep.mubr.f32.mxu1 %v376_v30 }
 0x11d   :  { %1190 = vmatmul.mubr.f32.gmra.mrb[6].mxu1 %v377_v31 }
 0x11e   :  { %1192 = vmatprep.mubr.f32.mxu1 %v378_v32 }
 0x121   :  { %1193 = vmatmul.mubr.f32.gmra.mrb[8].mxu1 %v379_v33 }
 0x122   :  { %1195 = vmatprep.mubr.f32.mxu1 %v380_v34 }
 0x125   :  { %1196 = vmatmul.mubr.f32.gmra.mrb[10].mxu1 %v381_v35 }
 0x126   :  { %1198 = vmatprep.mubr.f32.mxu1 %v382_v36 }
 0x129   :  { %1199 = vmatmul.mubr.f32.gmra.mrb[12].mxu1 %v383_v37 }
 0x12a   :  { %1201 = vmatprep.mubr.f32.mxu1 %v384_v38  ;;  %v480_v38 = vpop.permute.xlu1 %479 }
 0x12d   :  { %1202 = vmatmul.mubr.f32.gmra.mrb[14].mxu1 %v385_v39 }
 0x1e4   :  { %v1182_v47 = vpop.f32.mrb[0].mxu1 }
 0x1e5   :  { %v554_v48 = vadd.f32 %v1182_v47, %v410_v41  ;;  %v548_v49 = vpop.f32.mrb[1].mxu1  ;;  %v475_v41 = vpop.permute.xlu0 %474 }
 0x1e6   :  { %v549_v50 = vadd.f32 %v548_v49, %v405_v42  ;;  %v644_v49 = vld [vmem:[%s1803_s5 + $0x8] sm:$0xff] }
 0x1e7   :  { %v628_v51 = vmax.f32 %v554_v48, 0.0 }
 0x1e8   :  { %v627_v53 = vmax.f32 %v549_v50, 0.0  ;;  %v1185_v54 = vpop.f32.mrb[2].mxu1  ;;  %v645_v50 = vld [vmem:[%s1803_s5 + $0x10] sm:$0xff] }
 0x1e9   :  { %v564_v56 = vadd.f32 %v1185_v54, %v420_v43  ;;  %v558_v57 = vpop.f32.mrb[3].mxu1  ;;  %v649_v54 = vld [vmem:[%s1803_s5 + $0x30] sm:$0xff] }
 0x1ea   :  { %v1331_v58 = vpack.c.bf16 %v628_v51, %v627_v53  ;;  %v559_v59 = vadd.f32 %v558_v57, %v415_v44  ;;  %v646_v51 = vld [vmem:[%s1803_s5 + $0x18] sm:$0xff]  ;;  %v648_v53 = vld [vmem:[%s1803_s5 + $0x28] sm:$0xff] }
 0x1eb   :  { %v630_v60 = vmax.f32 %v564_v56, 0.0  ;;  %v651_v56 = vld [vmem:[%s1803_s5 + $0x40] sm:$0xff]  ;;  %v652_v57 = vld [vmem:[%s1803_s5 + $0x48] sm:$0xff] }
 0x1ec   :  { %v629_v61 = vmax.f32 %v559_v59, 0.0  ;;  %v1188_v62 = vpop.f32.mrb[4].mxu1  ;;  %1332 = vmatprep.subr.bf16.mxu0 %v1331_v58  ;;  %v654_v59 = vld [vmem:[%s1803_s5 + $0x58] sm:$0xff] }
 0x1ed   :  { %v574_v63 = vadd.f32 %v1188_v62, %v430_v45  ;;  %v568_v0 = vpop.f32.mrb[5].mxu1  ;;  %1334 = vmatpush3.bf16.msra.mxu0 %v1331_v58  ;;  %v653_v58 = vld [vmem:[%s1803_s5 + $0x50] sm:$0xff] }
 0x1ee   :  { %v1335_v2 = vpack.c.bf16 %v630_v60, %v629_v61  ;;  %v569_v3 = vadd.f32 %v568_v0, %v425_v46  ;;  %v655_v60 = vld [vmem:[%s1803_s5 + $0x60] sm:$0xff]  ;;  %v656_v61 = vld [vmem:[%s1803_s5 + $0x68] sm:$0xff]  ;;  %v657_v62 = vld [vmem:[%s1803_s5 + $0x70] sm:$0xff]  ;;  %v1419_v0 = vmov 0.0|0.0  }
 0x1ef   :  { %v632_v5 = vmax.f32 %v574_v63, 0.0  ;;  %v658_v63 = vld [vmem:[%s1803_s5 + $0x78] sm:$0xff]  ;;  %1363 = vmatprep.subr.bf16.mxu1 %v1419_v0 }
 0x1f0   :  { %v631_v6 = vmax.f32 %v569_v3, 0.0  ;;  %v1191_v7 = vpop.f32.mrb[6].mxu1  ;;  %1336 = vmatprep.subr.bf16.mxu0 %v1335_v2  ;;  %v678_v3 = vpop.permute.xlu0 %677 }
 0x1f1   :  { %v584_v8 = vadd.f32 %v1191_v7, %v440_v52  ;;  %v578_v9 = vpop.f32.mrb[7].mxu1  ;;  %1338 = vmatpush3.bf16.msra.mxu0 %v1335_v2  ;;  %v647_v52 = vld [vmem:[%s1803_s5 + $0x20] sm:$0xff]  ;;  %v683_v2 = vpop.permute.xlu1 %682 }
 0x1f2   :  { %v1339_v10 = vpack.c.bf16 %v632_v5, %v631_v6  ;;  %v579_v11 = vadd.f32 %v578_v9, %v435_v55  ;;  %v650_v55 = vld [vmem:[%s1803_s5 + $0x38] sm:$0xff] }
 0x1f3   :  { %v634_v12 = vmax.f32 %v584_v8, 0.0 }
 0x1f4   :  { %v633_v14 = vmax.f32 %v579_v11, 0.0  ;;  %v1194_v15 = vpop.f32.mrb[8].mxu1  ;;  %1340 = vmatprep.subr.bf16.mxu0 %v1339_v10  ;;  %v688_v5 = vpop.permute.xlu0 %687 }
 0x1f5   :  { %v594_v17 = vadd.f32 %v1194_v15, %v450_v1  ;;  %v588_v18 = vpop.f32.mrb[9].mxu1  ;;  %1342 = vmatpush3.bf16.msra.mxu0 %v1339_v10  ;;  %v1421_v1 = vmov 0.0  }
 0x1f6   :  { %v1343_v19 = vpack.c.bf16 %v634_v12, %v633_v14  ;;  %v589_v20 = vadd.f32 %v588_v18, %v445_v4  ;;  %1292 = vmatprep.mubr.msk.f32.mxu1 %vm1420_vm1, %v1421_v1  ;;  %v693_v4 = vpop.permute.xlu1 %692 }
 0x1f7   :  { %v636_v21 = vmax.f32 %v594_v17, 0.0 }
 0x1f8   :  { %v635_v22 = vmax.f32 %v589_v20, 0.0  ;;  %v1197_v23 = vpop.f32.mrb[10].mxu1  ;;  %1344 = vmatprep.subr.bf16.mxu0 %v1343_v19  ;;  %v698_v7 = vpop.permute.xlu0 %697 }
 0x1f9   :  { %v604_v24 = vadd.f32 %v1197_v23, %v460_v13  ;;  %v598_v25 = vpop.f32.mrb[11].mxu1  ;;  %1346 = vmatpush3.bf16.msra.mxu0 %v1343_v19 }
 0x1fa   :  { %v1347_v27 = vpack.c.bf16 %v636_v21, %v635_v22  ;;  %v599_v28 = vadd.f32 %v598_v25, %v455_v16  ;;  %v703_v6 = vpop.permute.xlu1 %702 }
 0x1fb   :  { %v638_v30 = vmax.f32 %v604_v24, 0.0 }
 0x1fc   :  { %v637_v31 = vmax.f32 %v599_v28, 0.0  ;;  %v1200_v32 = vpop.f32.mrb[12].mxu1  ;;  %1348 = vmatprep.subr.bf16.mxu0 %v1347_v27  ;;  %v708_v16 = vpop.permute.xlu0 %707 }
 0x1fd   :  { %v614_v33 = vadd.f32 %v1200_v32, %v470_v26  ;;  %v608_v34 = vpop.f32.mrb[13].mxu1  ;;  %1350 = vmatpush3.bf16.msra.mxu0 %v1347_v27 }
 0x1fe   :  { %v1351_v35 = vpack.c.bf16 %v638_v30, %v637_v31  ;;  %v609_v36 = vadd.f32 %v608_v34, %v465_v29  ;;  %v713_v13 = vpop.permute.xlu1 %712 }
 0x1ff   :  { %v640_v37 = vmax.f32 %v614_v33, 0.0 }
 0x200   :  { %v639_v39 = vmax.f32 %v609_v36, 0.0  ;;  %v1203_v40 = vpop.f32.mrb[14].mxu1  ;;  %1352 = vmatprep.subr.bf16.mxu0 %v1351_v35  ;;  %v718_v29 = vpop.permute.xlu0 %717 }
 0x201   :  { %v624_v42 = vadd.f32 %v1203_v40, %v480_v38  ;;  %v618_v43 = vpop.f32.mrb[15].mxu1  ;;  %1354 = vmatpush3.bf16.msra.mxu0 %v1351_v35 }
 0x202   :  { %v1355_v44 = vpack.c.bf16 %v640_v37, %v639_v39  ;;  %v619_v45 = vadd.f32 %v618_v43, %v475_v41  ;;  %v723_v26 = vpop.permute.xlu1 %722 }
 0x203   :  { %v642_v46 = vmax.f32 %v624_v42, 0.0 }
 0x204   :  { %v641_v47 = vmax.f32 %v619_v45, 0.0  ;;  %1356 = vmatprep.subr.bf16.mxu0 %v1355_v44  ;;  %v728_v41 = vpop.permute.xlu0 %727 }
 0x205   :  { %1358 = vmatpush3.bf16.msra.mxu0 %v1355_v44 }
 0x206   :  { %v1359_v48 = vpack.c.bf16 %v642_v46, %v641_v47  ;;  %v733_v38 = vpop.permute.xlu1 %732 }
 0x208   :  { %1360 = vmatprep.subr.bf16.mxu0 %v1359_v48 }
 0x209   :  { %1362 = vmatpush3.bf16.msra.mxu0 %v1359_v48 }
 0x20c   :  { %1237 = vmatmul.mubr.f32.vlgmr.msra.gmra.mrb[16].mxu0 %v644_v49 }
 0x20d   :  { %1239 = vmatprep.mubr.f32.mxu0 %v645_v50 }
 0x210   :  { %1240 = vmatmul.mubr.f32.gmra.mrb[18].mxu0 %v646_v51  ;;  %v743_v51 = vpop.permute.xlu1 %742 }
 0x211   :  { %1242 = vmatprep.mubr.f32.mxu0 %v647_v52 }
 0x214   :  { %1243 = vmatmul.mubr.f32.gmra.mrb[20].mxu0 %v648_v53 }
 0x215   :  { %1245 = vmatprep.mubr.f32.mxu0 %v649_v54  ;;  %v738_v54 = vpop.permute.xlu0 %737 }
 0x218   :  { %1246 = vmatmul.mubr.f32.gmra.mrb[22].mxu0 %v650_v55 }
 0x219   :  { %1248 = vmatprep.mubr.f32.mxu0 %v651_v56 }
 0x21c   :  { %1249 = vmatmul.mubr.f32.gmra.mrb[24].mxu0 %v652_v57 }
 0x21d   :  { %1251 = vmatprep.mubr.f32.mxu0 %v653_v58 }
 0x220   :  { %1252 = vmatmul.mubr.f32.gmra.mrb[26].mxu0 %v654_v59 }
 0x221   :  { %1254 = vmatprep.mubr.f32.mxu0 %v655_v60 }
 0x224   :  { %1255 = vmatmul.mubr.f32.gmra.mrb[28].mxu0 %v656_v61 }
 0x225   :  { %1257 = vmatprep.mubr.f32.mxu0 %v657_v62 }
 0x228   :  { %1258 = vmatmul.mubr.f32.gmra.mrb[30].mxu0 %v658_v63  ;;  %v753_v63 = vpop.permute.xlu1 %752 }
 0x2df   :  { %v1238_v8 = vpop.f32.mrb[16].mxu0 }
 0x2e0   :  { %v827_v9 = vadd.f32 %v1238_v8, %v683_v2  ;;  %v821_v10 = vpop.f32.mrb[17].mxu0 }
 0x2e1   :  { %v822_v11 = vadd.f32 %v821_v10, %v678_v3  ;;  %v748_v3 = vpop.permute.xlu0 %747 }
 0x2e2   :  { %v901_v12 = vmax.f32 %v827_v9, 0.0 }
 0x2e3   :  { %v900_v14 = vmax.f32 %v822_v11, 0.0  ;;  %v1241_v15 = vpop.f32.mrb[18].mxu0  ;;  %v916_v11 = vld [vmem:[%s1805_s7] sm:$0x1] }
 0x2e4   :  { %v837_v17 = vadd.f32 %v1241_v15, %v693_v4  ;;  %v831_v18 = vpop.f32.mrb[19].mxu0 }
 0x2e5   :  { %v1364_v19 = vpack.c.bf16 %v901_v12, %v900_v14  ;;  %v832_v20 = vadd.f32 %v831_v18, %v688_v5 }
 0x2e6   :  { %v903_v21 = vmax.f32 %v837_v17, 0.0 }
 0x2e7   :  { %v902_v22 = vmax.f32 %v832_v20, 0.0  ;;  %v1244_v23 = vpop.f32.mrb[20].mxu0  ;;  %1365 = vmatpush3.bf16.msra.mxu1 %v1364_v19 }
 0x2e8   :  { %v847_v24 = vadd.f32 %v1244_v23, %v703_v6  ;;  %v841_v25 = vpop.f32.mrb[21].mxu0  ;;  %1366 = vmatprep.subr.bf16.mxu1 %v1419_v0 }
 0x2e9   :  { %v1367_v27 = vpack.c.bf16 %v903_v21, %v902_v22  ;;  %v842_v28 = vadd.f32 %v841_v25, %v698_v7 }
 0x2ea   :  { %v905_v30 = vmax.f32 %v847_v24, 0.0 }
 0x2eb   :  { %v904_v31 = vmax.f32 %v842_v28, 0.0  ;;  %v1247_v32 = vpop.f32.mrb[22].mxu0  ;;  %1368 = vmatpush3.bf16.msra.mxu1 %v1367_v27 }
 0x2ec   :  { %v857_v33 = vadd.f32 %v1247_v32, %v713_v13  ;;  %v851_v34 = vpop.f32.mrb[23].mxu0  ;;  %1369 = vmatprep.subr.bf16.mxu1 %v1419_v0 }
 0x2ed   :  { %v1370_v35 = vpack.c.bf16 %v905_v30, %v904_v31  ;;  %v852_v36 = vadd.f32 %v851_v34, %v708_v16 }
 0x2ee   :  { %v907_v37 = vmax.f32 %v857_v33, 0.0 }
 0x2ef   :  { %v906_v39 = vmax.f32 %v852_v36, 0.0  ;;  %v1250_v40 = vpop.f32.mrb[24].mxu0  ;;  %1371 = vmatpush3.bf16.msra.mxu1 %v1370_v35 }
 0x2f0   :  { %v867_v42 = vadd.f32 %v1250_v40, %v723_v26  ;;  %v861_v43 = vpop.f32.mrb[25].mxu0  ;;  %1372 = vmatprep.subr.bf16.mxu1 %v1419_v0 }
 0x2f1   :  { %v1373_v44 = vpack.c.bf16 %v907_v37, %v906_v39  ;;  %v862_v45 = vadd.f32 %v861_v43, %v718_v29 }
 0x2f2   :  { %v909_v46 = vmax.f32 %v867_v42, 0.0 }
 0x2f3   :  { %v908_v47 = vmax.f32 %v862_v45, 0.0  ;;  %v1253_v48 = vpop.f32.mrb[26].mxu0  ;;  %1374 = vmatpush3.bf16.msra.mxu1 %v1373_v44 }
 0x2f4   :  { %v877_v49 = vadd.f32 %v1253_v48, %v733_v38  ;;  %v871_v50 = vpop.f32.mrb[27].mxu0  ;;  %1375 = vmatprep.subr.bf16.mxu1 %v1419_v0 }
 0x2f5   :  { %v1376_v52 = vpack.c.bf16 %v909_v46, %v908_v47  ;;  %v872_v53 = vadd.f32 %v871_v50, %v728_v41 }
 0x2f6   :  { %v911_v55 = vmax.f32 %v877_v49, 0.0 }
 0x2f7   :  { %v910_v56 = vmax.f32 %v872_v53, 0.0  ;;  %v1256_v57 = vpop.f32.mrb[28].mxu0  ;;  %1377 = vmatpush3.bf16.msra.mxu1 %v1376_v52 }
 0x2f8   :  { %v887_v58 = vadd.f32 %v1256_v57, %v743_v51  ;;  %v881_v59 = vpop.f32.mrb[29].mxu0  ;;  %1378 = vmatprep.subr.bf16.mxu1 %v1419_v0 }
 0x2f9   :  { %v1379_v60 = vpack.c.bf16 %v911_v55, %v910_v56  ;;  %v882_v61 = vadd.f32 %v881_v59, %v738_v54 }
 0x2fa   :  { %v913_v62 = vmax.f32 %v887_v58, 0.0 }
 0x2fb   :  { %v912_v1 = vmax.f32 %v882_v61, 0.0  ;;  %v1259_v2 = vpop.f32.mrb[30].mxu0  ;;  %1380 = vmatpush3.bf16.msra.mxu1 %v1379_v60 }
 0x2fc   :  { %v897_v4 = vadd.f32 %v1259_v2, %v753_v63  ;;  %v891_v5 = vpop.f32.mrb[31].mxu0  ;;  %1381 = vmatprep.subr.bf16.mxu1 %v1419_v0 }
 0x2fd   :  { %v1382_v6 = vpack.c.bf16 %v913_v62, %v912_v1  ;;  %v892_v7 = vadd.f32 %v891_v5, %v748_v3 }
 0x2fe   :  { %v915_v8 = vmax.f32 %v897_v4, 0.0 }
 0x2ff   :  { %v914_v9 = vmax.f32 %v892_v7, 0.0  ;;  %1383 = vmatpush3.bf16.msra.mxu1 %v1382_v6 }
 0x300   :  { %1384 = vmatprep.subr.bf16.mxu1 %v1419_v0 }
 0x301   :  { %v1385_v10 = vpack.c.bf16 %v915_v8, %v914_v9 }
 0x303   :  { %1386 = vmatpush3.bf16.msra.mxu1 %v1385_v10 }
 0x306   :  { %1293 = vmatmul.mubr.f32.vlgmr.msra.gmra.mrb[16].mxu1 %v916_v11 }
 0x3d9   :  { %v983_v12 = vpop.f32.mrb[16].mxu1 }
 0x3da   :  { %987 = vst [vmem:[#allocation2] sm:$0x1] %v983_v12  ;;  %v1294_v13 = vpop.f32.mrb[17].mxu1 }
 0x3db   :  { %1405 = shalt.err (!%p1402_p4)
}
 0x3dc   :  { %s1406_s24 = scalar_lea.hbm %s1806_s8, 16 }
 0x3dd   :  { %p1407_p5 = scmp.ne.s32.totalorder %s1806_s8, %s1406_s24  ;;  %p1410_p6 = scmp.lt.u32.totalorder %s1406_s24, %s1806_s8 }
 0x3df   :  { %p1412_p7 = pnand %p1410_p6, %p1407_p5 }
 0x3e1   :  { %1415 = shalt.err (!%p1412_p7)
}
 0x3e2   :  { %997 = dma.vmem_to_hbm [thread:$0]  %s995_s20, 16, %s1806_s8, [#allocation3]  }
 0x3e3   :  { %1416 = dma.done.wait [#allocation3], 16  }
 0x3e4   :  { %1417 = vsyncadd [#allocation3], 4294967280 }
 0x3e5   :  { %1001 = vsyncpa [#allocation3], 1 }

</bundles_post_ra>
